<compile_context>
chip_gen: v7x
topology: tpu7x:2x2x1
jax: 0.10.0
libtpu: 0.0.40
codegen_flags: <defaults>
</compile_context>

<pallas_src>
import math

import jax
import jax.numpy as jnp
import numpy as np
from jax import lax
from jax.experimental import pallas as pl
from jax.experimental.pallas import tpu as pltpu


def graph_transformer_layer(h, A, Qw, Kw, beta, W):
    """h: [N, D] f32, A: [N, N] f32 (A[u,v]=1 iff edge u->v),
    Qw/Kw: [H, D, Z] f32, beta: scalar, W: [D, D*ffn] f32."""
    N, D = h.shape
    H, _, Z = Qw.shape
    HZ = H * Z

    # ---- wrapper-side layout plumbing (free; keeps XLU work out of the kernel) ----
    # Fused Q|K projection weights: [D, 2*H*Z], column blocks = per-head slices.
    w_qk = jnp.concatenate(
        [jnp.transpose(Qw, (1, 0, 2)).reshape(D, HZ),
         jnp.transpose(Kw, (1, 0, 2)).reshape(D, HZ)],
        axis=1)
    At = A.T                                             # dst-major adjacency
    inv_beta = jnp.reshape(1.0 / beta, (1, 1)).astype(jnp.float32)

    contract_last = (((1,), (1,)), ((), ()))             # contract last dims
    contract_first = (((0,), (0,)), ((), ()))            # contract first dims

    def kernel(inv_beta_ref, h_ref, wqk_ref, a_ref, at_ref, w_ref, out_ref):
        inv_b = inv_beta_ref[0, 0]

        hx = h_ref[...]           # [N, D]
        Wqk = wqk_ref[...]        # [D, 2*H*Z]
        A_m = a_ref[...]          # [N, N]  A[u, v]
        At_m = at_ref[...]        # [N, N]  A[u, v] transposed (dst-major)

        # Fused node projections: one lane-dense MXU matmul for all heads & Q/K.
        QK = jnp.dot(hx, Wqk, preferred_element_type=jnp.float32)   # [N, 2*H*Z]

        acc = jnp.zeros((N, D), jnp.float32)

        for head in range(H):     # H is small & static -> trace-time unroll
            q_sl = slice(head * Z, (head + 1) * Z)
            k_sl = slice(HZ + head * Z, HZ + (head + 1) * Z)
            Q_h = QK[:, q_sl]     # [N, Z]
            K_h = QK[:, k_sl]     # [N, Z]
            Qw_h = Wqk[:, q_sl]   # [D, Z]  (this head's Q projection)
            Kw_h = Wqk[:, k_sl]   # [D, Z]

            # F1[n,d] = sum_z Qw_h[d,z] * K_h[n,z]; F2 analogous (no .T needed).
            F1 = lax.dot_general(K_h, Qw_h, contract_last,
                                 preferred_element_type=jnp.float32)  # [N, D]
            F2 = lax.dot_general(Q_h, Kw_h, contract_last,
                                 preferred_element_type=jnp.float32)  # [N, D]

            # Single score matrix: S2[u,v] = <Q_h[u], K_h[v]>. Since
            # S1[u,v] = <K_h[u], Q_h[v]> = S2[v,u], both edge-score tensors are
            # derived from the same exp stream P:
            #   E2  = A  ⊙ P          (score_2 on edge u->v)
            #   E1ᵀ = Aᵀ ⊙ P          (score   on edge u->v, dst-major)
            S2 = lax.dot_general(Q_h, K_h, contract_last,
                                 preferred_element_type=jnp.float32)  # [N, N]
            P = jnp.exp(jnp.clip(S2 * inv_b, -5.0, 5.0))
            E2 = A_m * P
            E1t = At_m * P

            # z[v] = sum over incoming edges of score  (row sums of E1ᵀ)
            z = jnp.sum(E1t, axis=-1, keepdims=True)                  # [N, 1]
            inv_z = jnp.where(z > 0.0, pl.reciprocal(z, approx=True), 0.0)

            # T1[v] = sum_u E1[u,v] * F1[u]        (fn.src_mul_edge + fn.sum)
            T1 = jnp.dot(E1t, F1, preferred_element_type=jnp.float32)  # [N, D]
            # T2[v] = sum_u E2[u,v] * F2[u] / z[u] (custom_message_func + fn.sum)
            T2 = lax.dot_general(E2, F2 * inv_z, contract_first,
                                 preferred_element_type=jnp.float32)   # [N, D]

            acc = acc + T1 * inv_z + T2   # head_out_1 + head_out_2, summed over heads

        # FFN branch (after attention so it overlaps the tail, not head 0):
        #   h2 = relu(h @ W); dropout(p=0) == identity; h2 = h2 @ W.T
        # TODO(synk): for v6e/v7x throughput, cast MXU operands to bf16 and, for
        # large N, tile the dst axis of A / store A as a narrow mask.
        Wf = w_ref[...]
        h2 = jnp.maximum(jnp.dot(hx, Wf, preferred_element_type=jnp.float32), 0.0)
        ffn = lax.dot_general(h2, Wf, contract_last,
                              preferred_element_type=jnp.float32)      # [N, D]

        out_ref[...] = acc + ffn

    return pl.pallas_call(
        kernel,
        out_shape=jax.ShapeDtypeStruct((N, D), jnp.float32),
        in_specs=[
            pl.BlockSpec(memory_space=pltpu.MemorySpace.SMEM),   # inv_beta scalar
            pl.BlockSpec(memory_space=pltpu.MemorySpace.VMEM),   # h
            pl.BlockSpec(memory_space=pltpu.MemorySpace.VMEM),   # fused Q|K weights
            pl.BlockSpec(memory_space=pltpu.MemorySpace.VMEM),   # A
            pl.BlockSpec(memory_space=pltpu.MemorySpace.VMEM),   # A.T
            pl.BlockSpec(memory_space=pltpu.MemorySpace.VMEM),   # FFN weight W
        ],
        out_specs=pl.BlockSpec(memory_space=pltpu.MemorySpace.VMEM),
    )(inv_beta, h, w_qk, A, At, W)


def reference(h, A, Qw, Kw, beta, W):
    """Pure-JAX re-implementation of the PyTorch forward (dense adjacency)."""
    Q_h = jnp.einsum('nd,hdz->nhz', h, Qw)
    K_h = jnp.einsum('nd,hdz->nhz', h, Kw)
    F1 = jnp.einsum('hdz,nhz->nhd', Qw, K_h)
    F2 = jnp.einsum('hdz,nhz->nhd', Kw, Q_h)
    S1 = jnp.einsum('uhz,vhz->uvh', K_h, Q_h)
    E1 = A[:, :, None] * jnp.exp(jnp.clip(S1 / beta, -5.0, 5.0))
    z = jnp.sum(E1, axis=0)                                    # [v, h]
    T1 = jnp.einsum('uvh,uhd->vhd', E1, F1)
    S2 = jnp.einsum('uhz,vhz->uvh', Q_h, K_h)
    E2 = A[:, :, None] * jnp.exp(jnp.clip(S2 / beta, -5.0, 5.0))
    T2 = jnp.einsum('uvh,uhd->vhd', E2, F2 / z[:, :, None])
    attn = jnp.sum(T1 / z[:, :, None] + T2, axis=1)
    h2 = jnp.maximum(h @ W, 0.0) @ W.T
    return attn + h2


if __name__ == "__main__":
    # Small shapes: N=8 graph nodes, in_dim = out_dim = 32, 2 heads, ffn=4.
    N, D, H, FFN = 8, 32, 2, 4
    Z = D  # per-head projection dim == out_dim in the PyTorch module

    key = jax.random.PRNGKey(0)
    k_h, k_q, k_k, k_w = jax.random.split(key, 4)

    # Node features
    h = jax.random.normal(k_h, (N, D), dtype=jnp.float32)

    # Parameters (deterministic, matching the PyTorch init distributions)
    Q_param = 0.01 * jax.random.normal(k_q, (D, H, Z), dtype=jnp.float32)  # [in_dim, H, out_dim]
    K_param = 0.01 * jax.random.normal(k_k, (D, H, Z), dtype=jnp.float32)
    Qw = jnp.transpose(Q_param, (1, 0, 2))   # [H, D, Z]
    Kw = jnp.transpose(K_param, (1, 0, 2))
    beta = jnp.float32(math.sqrt(Z))         # nn.init.constant_(sqrt(out_dim))
    bound = 1.0 / math.sqrt(D)
    W = jax.random.uniform(k_w, (D, D * FFN), dtype=jnp.float32,
                           minval=-bound, maxval=bound)

    # Deterministic graph: ring edges u -> (u+1) % N plus self-loops, so every
    # node has incoming edges (z > 0).
    eye = jnp.eye(N, dtype=jnp.float32)
    A = jnp.clip(eye + jnp.roll(eye, 1, axis=1), 0.0, 1.0)

    out = graph_transformer_layer(h, A, Qw, Kw, beta, W)
    out = jax.block_until_ready(out)

    ref = jax.block_until_ready(reference(h, A, Qw, Kw, beta, W))
    np.testing.assert_allclose(np.asarray(out), np.asarray(ref), rtol=1e-2, atol=1e-3)

    print("KERNEL_OK")
</pallas_src>

<mosaic_0001>
module attributes {stable_mosaic.version = 11 : i64} {
  func.func @kernel(%arg0: memref<1x1xf32, #tpu.memory_space<smem>>, %arg1: memref<8x32xf32, #tpu.memory_space<vmem>>, %arg2: memref<32x128xf32, #tpu.memory_space<vmem>>, %arg3: memref<8x8xf32, #tpu.memory_space<vmem>>, %arg4: memref<8x8xf32, #tpu.memory_space<vmem>>, %arg5: memref<32x128xf32, #tpu.memory_space<vmem>>, %arg6: memref<8x32xf32, #tpu.memory_space<vmem>>) attributes {dimension_semantics = [], scalar_prefetch = 0 : i64, scratch_operands = 0 : i64, tpu.core_type = #tpu.core_type<tc>} {
    %c0 = arith.constant 0 : index
    %c0_0 = arith.constant 0 : index
    %0 = memref.load %arg0[%c0, %c0_0] : memref<1x1xf32, #tpu.memory_space<smem>>
    %c0_1 = arith.constant 0 : index
    %c0_2 = arith.constant 0 : index
    %1 = vector.load %arg1[%c0_1, %c0_2] : memref<8x32xf32, #tpu.memory_space<vmem>>, vector<8x32xf32>
    %c0_3 = arith.constant 0 : index
    %c0_4 = arith.constant 0 : index
    %2 = vector.load %arg2[%c0_3, %c0_4] : memref<32x128xf32, #tpu.memory_space<vmem>>, vector<32x128xf32>
    %c0_5 = arith.constant 0 : index
    %c0_6 = arith.constant 0 : index
    %3 = vector.load %arg3[%c0_5, %c0_6] : memref<8x8xf32, #tpu.memory_space<vmem>>, vector<8x8xf32>
    %c0_7 = arith.constant 0 : index
    %c0_8 = arith.constant 0 : index
    %4 = vector.load %arg4[%c0_7, %c0_8] : memref<8x8xf32, #tpu.memory_space<vmem>>, vector<8x8xf32>
    %cst = arith.constant dense<0.000000e+00> : vector<8x128xf32>
    %5 = tpu.matmul %1, %2, %cst {dimension_numbers = #tpu.dot_dimension_numbers<[1], [0], [0], [1], [0, 0, 1, 1], [], []>} : vector<8x32xf32>, vector<32x128xf32>, vector<8x128xf32> -> vector<8x128xf32>
    %cst_9 = arith.constant 0.000000e+00 : f32
    %6 = vector.broadcast %cst_9 : f32 to vector<8x32xf32>
    %7 = vector.extract_strided_slice %5 {offsets = [0, 0], sizes = [8, 32], strides = [1, 1]} : vector<8x128xf32> to vector<8x32xf32>
    %8 = vector.extract_strided_slice %5 {offsets = [0, 64], sizes = [8, 32], strides = [1, 1]} : vector<8x128xf32> to vector<8x32xf32>
    %9 = vector.extract_strided_slice %2 {offsets = [0, 0], sizes = [32, 32], strides = [1, 1]} : vector<32x128xf32> to vector<32x32xf32>
    %10 = vector.extract_strided_slice %2 {offsets = [0, 64], sizes = [32, 32], strides = [1, 1]} : vector<32x128xf32> to vector<32x32xf32>
    %cst_10 = arith.constant dense<0.000000e+00> : vector<8x32xf32>
    %11 = tpu.matmul %8, %9, %cst_10 {dimension_numbers = #tpu.dot_dimension_numbers<[1], [1], [0], [0], [0, 0, 1, 0], [], []>} : vector<8x32xf32>, vector<32x32xf32>, vector<8x32xf32> -> vector<8x32xf32>
    %cst_11 = arith.constant dense<0.000000e+00> : vector<8x32xf32>
    %12 = tpu.matmul %7, %10, %cst_11 {dimension_numbers = #tpu.dot_dimension_numbers<[1], [1], [0], [0], [0, 0, 1, 0], [], []>} : vector<8x32xf32>, vector<32x32xf32>, vector<8x32xf32> -> vector<8x32xf32>
    %cst_12 = arith.constant dense<0.000000e+00> : vector<8x8xf32>
    %13 = tpu.matmul %7, %8, %cst_12 {dimension_numbers = #tpu.dot_dimension_numbers<[1], [1], [0], [0], [0, 0, 1, 0], [], []>} : vector<8x32xf32>, vector<8x32xf32>, vector<8x8xf32> -> vector<8x8xf32>
    %14 = vector.broadcast %0 : f32 to vector<8x8xf32>
    %15 = arith.mulf %13, %14 : vector<8x8xf32>
    %cst_13 = arith.constant -5.000000e+00 : f32
    %cst_14 = arith.constant 5.000000e+00 : f32
    %16 = vector.broadcast %cst_13 : f32 to vector<8x8xf32>
    %17 = arith.maximumf %16, %15 : vector<8x8xf32>
    %18 = vector.broadcast %cst_14 : f32 to vector<8x8xf32>
    %19 = arith.minimumf %18, %17 : vector<8x8xf32>
    %20 = math.exp %19 : vector<8x8xf32>
    %21 = arith.mulf %3, %20 : vector<8x8xf32>
    %22 = arith.mulf %4, %20 : vector<8x8xf32>
    %cst_15 = arith.constant dense<0.000000e+00> : vector<8xf32>
    %23 = vector.multi_reduction <add>, %22, %cst_15 [1] : vector<8x8xf32> to vector<8xf32>
    %24 = vector.shape_cast %23 : vector<8xf32> to vector<8x1xf32>
    %cst_16 = arith.constant 0.000000e+00 : f32
    %25 = vector.broadcast %cst_16 : f32 to vector<8x1xf32>
    %26 = arith.cmpf ogt, %24, %25 : vector<8x1xf32>
    %27 = tpu.reciprocal %24 {approx = true} : vector<8x1xf32> -> vector<8x1xf32>
    %cst_17 = arith.constant 0.000000e+00 : f32
    %28 = vector.broadcast %cst_17 : f32 to vector<8x1xf32>
    %29 = arith.select %26, %27, %28 : vector<8x1xi1>, vector<8x1xf32>
    %cst_18 = arith.constant dense<0.000000e+00> : vector<8x32xf32>
    %30 = tpu.matmul %22, %11, %cst_18 {dimension_numbers = #tpu.dot_dimension_numbers<[1], [0], [0], [1], [0, 0, 1, 1], [], []>} : vector<8x8xf32>, vector<8x32xf32>, vector<8x32xf32> -> vector<8x32xf32>
    %31 = vector.broadcast %29 : vector<8x1xf32> to vector<8x32xf32>
    %32 = arith.mulf %12, %31 : vector<8x32xf32>
    %cst_19 = arith.constant dense<0.000000e+00> : vector<8x32xf32>
    %33 = tpu.matmul %21, %32, %cst_19 {dimension_numbers = #tpu.dot_dimension_numbers<[0], [0], [1], [1], [0, 1, 1, 1], [], []>} : vector<8x8xf32>, vector<8x32xf32>, vector<8x32xf32> -> vector<8x32xf32>
    %34 = vector.broadcast %29 : vector<8x1xf32> to vector<8x32xf32>
    %35 = arith.mulf %30, %34 : vector<8x32xf32>
    %36 = arith.addf %6, %35 : vector<8x32xf32>
    %37 = arith.addf %36, %33 : vector<8x32xf32>
    %38 = vector.extract_strided_slice %5 {offsets = [0, 32], sizes = [8, 32], strides = [1, 1]} : vector<8x128xf32> to vector<8x32xf32>
    %39 = vector.extract_strided_slice %5 {offsets = [0, 96], sizes = [8, 32], strides = [1, 1]} : vector<8x128xf32> to vector<8x32xf32>
    %40 = vector.extract_strided_slice %2 {offsets = [0, 32], sizes = [32, 32], strides = [1, 1]} : vector<32x128xf32> to vector<32x32xf32>
    %41 = vector.extract_strided_slice %2 {offsets = [0, 96], sizes = [32, 32], strides = [1, 1]} : vector<32x128xf32> to vector<32x32xf32>
    %cst_20 = arith.constant dense<0.000000e+00> : vector<8x32xf32>
    %42 = tpu.matmul %39, %40, %cst_20 {dimension_numbers = #tpu.dot_dimension_numbers<[1], [1], [0], [0], [0, 0, 1, 0], [], []>} : vector<8x32xf32>, vector<32x32xf32>, vector<8x32xf32> -> vector<8x32xf32>
    %cst_21 = arith.constant dense<0.000000e+00> : vector<8x32xf32>
    %43 = tpu.matmul %38, %41, %cst_21 {dimension_numbers = #tpu.dot_dimension_numbers<[1], [1], [0], [0], [0, 0, 1, 0], [], []>} : vector<8x32xf32>, vector<32x32xf32>, vector<8x32xf32> -> vector<8x32xf32>
    %cst_22 = arith.constant dense<0.000000e+00> : vector<8x8xf32>
    %44 = tpu.matmul %38, %39, %cst_22 {dimension_numbers = #tpu.dot_dimension_numbers<[1], [1], [0], [0], [0, 0, 1, 0], [], []>} : vector<8x32xf32>, vector<8x32xf32>, vector<8x8xf32> -> vector<8x8xf32>
    %45 = vector.broadcast %0 : f32 to vector<8x8xf32>
    %46 = arith.mulf %44, %45 : vector<8x8xf32>
    %cst_23 = arith.constant -5.000000e+00 : f32
    %cst_24 = arith.constant 5.000000e+00 : f32
    %47 = vector.broadcast %cst_23 : f32 to vector<8x8xf32>
    %48 = arith.maximumf %47, %46 : vector<8x8xf32>
    %49 = vector.broadcast %cst_24 : f32 to vector<8x8xf32>
    %50 = arith.minimumf %49, %48 : vector<8x8xf32>
    %51 = math.exp %50 : vector<8x8xf32>
    %52 = arith.mulf %3, %51 : vector<8x8xf32>
    %53 = arith.mulf %4, %51 : vector<8x8xf32>
    %cst_25 = arith.constant dense<0.000000e+00> : vector<8xf32>
    %54 = vector.multi_reduction <add>, %53, %cst_25 [1] : vector<8x8xf32> to vector<8xf32>
    %55 = vector.shape_cast %54 : vector<8xf32> to vector<8x1xf32>
    %cst_26 = arith.constant 0.000000e+00 : f32
    %56 = vector.broadcast %cst_26 : f32 to vector<8x1xf32>
    %57 = arith.cmpf ogt, %55, %56 : vector<8x1xf32>
    %58 = tpu.reciprocal %55 {approx = true} : vector<8x1xf32> -> vector<8x1xf32>
    %cst_27 = arith.constant 0.000000e+00 : f32
    %59 = vector.broadcast %cst_27 : f32 to vector<8x1xf32>
    %60 = arith.select %57, %58, %59 : vector<8x1xi1>, vector<8x1xf32>
    %cst_28 = arith.constant dense<0.000000e+00> : vector<8x32xf32>
    %61 = tpu.matmul %53, %42, %cst_28 {dimension_numbers = #tpu.dot_dimension_numbers<[1], [0], [0], [1], [0, 0, 1, 1], [], []>} : vector<8x8xf32>, vector<8x32xf32>, vector<8x32xf32> -> vector<8x32xf32>
    %62 = vector.broadcast %60 : vector<8x1xf32> to vector<8x32xf32>
    %63 = arith.mulf %43, %62 : vector<8x32xf32>
    %cst_29 = arith.constant dense<0.000000e+00> : vector<8x32xf32>
    %64 = tpu.matmul %52, %63, %cst_29 {dimension_numbers = #tpu.dot_dimension_numbers<[0], [0], [1], [1], [0, 1, 1, 1], [], []>} : vector<8x8xf32>, vector<8x32xf32>, vector<8x32xf32> -> vector<8x32xf32>
    %65 = vector.broadcast %60 : vector<8x1xf32> to vector<8x32xf32>
    %66 = arith.mulf %61, %65 : vector<8x32xf32>
    %67 = arith.addf %37, %66 : vector<8x32xf32>
    %68 = arith.addf %67, %64 : vector<8x32xf32>
    %c0_30 = arith.constant 0 : index
    %c0_31 = arith.constant 0 : index
    %69 = vector.load %arg5[%c0_30, %c0_31] : memref<32x128xf32, #tpu.memory_space<vmem>>, vector<32x128xf32>
    %cst_32 = arith.constant dense<0.000000e+00> : vector<8x128xf32>
    %70 = tpu.matmul %1, %69, %cst_32 {dimension_numbers = #tpu.dot_dimension_numbers<[1], [0], [0], [1], [0, 0, 1, 1], [], []>} : vector<8x32xf32>, vector<32x128xf32>, vector<8x128xf32> -> vector<8x128xf32>
    %cst_33 = arith.constant 0.000000e+00 : f32
    %71 = vector.broadcast %cst_33 : f32 to vector<8x128xf32>
    %72 = arith.maximumf %70, %71 : vector<8x128xf32>
    %cst_34 = arith.constant dense<0.000000e+00> : vector<8x32xf32>
    %73 = tpu.matmul %72, %69, %cst_34 {dimension_numbers = #tpu.dot_dimension_numbers<[1], [1], [0], [0], [0, 0, 1, 0], [], []>} : vector<8x128xf32>, vector<32x128xf32>, vector<8x32xf32> -> vector<8x32xf32>
    %74 = arith.addf %68, %73 : vector<8x32xf32>
    %c0_35 = arith.constant 0 : index
    %c0_36 = arith.constant 0 : index
    %75 = vector.load %arg6[%c0_35, %c0_36] : memref<8x32xf32, #tpu.memory_space<vmem>>, vector<8x32xf32>
    tpu.vector_store %arg6[%c0_35, %c0_36], %74 {strides = array<i32>} : memref<8x32xf32, #tpu.memory_space<vmem>>, vector<8x32xf32>,
    return
  }
}

</mosaic_0001>

<bundles_post_ra>
// kernel: tpu_custom_call.1
= control target key start
LH: loop header
LB: loop body
LE: loop exit
PB: predicated region body
PF: predicated region fallthrough
CT: control target
= control target key end

     0   :  { %12 = vsyncpa [#allocation4], 0  ;;  %s1853_s0 = inlined_call_operand.<no memory space> [shape: f32[1,1], index: 0, kind: input, shape index: {}]   ;;  %s1854_s1 = inlined_call_operand.hbm [shape: f32[8,32], index: 1, kind: input, shape index: {}]   ;;  %s1855_s2 = inlined_call_operand.hbm [shape: f32[32,128], index: 2, kind: input, shape index: {}]   ;;  %s1856_s3 = inlined_call_operand.vmem [shape: f32[8,8], index: 3, kind: input, shape index: {}]   ;;  %s1857_s4 = inlined_call_operand.hbm [shape: f32[8,8], index: 4, kind: input, shape index: {}]   ;;  %s1858_s5 = inlined_call_operand.hbm [shape: f32[32,128], index: 5, kind: input, shape index: {}]   ;;  %s1859_s6 = inlined_call_operand.hbm [shape: f32[8,32], index: 6, kind: output, shape index: {}]  }
   0x1   :  { %13 = vsyncpa [#allocation7], 0 }
   0x2   :  { %14 = vsyncpa [#allocation10], 0 }
   0x3   :  { %15 = vsyncpa [#allocation5], 0  ;;  %s1620_s21 = smov [#allocation6]   ;;  %s1502_s25 = scalar_lea.hbm %s1855_s2, 512 }
   0x4   :  { %s33_s22 = sshll.u32 %s1620_s21, 4  ;;  %p1503_p0 = scmp.ne.s32.totalorder %s1855_s2, %s1502_s25  ;;  %s34_s22 = int_to_ptr.vmem [resolvable:$true] %s33_s22 }
   0x5   :  { %p1506_p1 = scmp.lt.u32.totalorder %s1502_s25, %s1855_s2 }
   0x7   :  { %p1508_p2 = pnand %p1506_p1, %p1503_p0 }
   0x9   :  { %1511 = shalt.err (!%p1508_p2)
}
   0xa   :  { %s1512_s30 = scalar_lea.vmem %s34_s22, 512  ;;  %p1517_p4 = scmp.lt.s32.totalorder %s34_s22, %s34_s22 }
   0xb   :  { %p1513_p3 = scmp.ne.s32.totalorder %s34_s22, %s1512_s30  ;;  %p1518_p5 = scmp.lt.s32.totalorder %s1512_s30, %s1512_s30 }
   0xd   :  { %p1519_p6 = por %p1518_p5, %p1517_p4 }
   0xf   :  { %p1520_p7 = pnand %p1519_p6, %p1513_p3 }
  0x11   :  { %1523 = shalt.err (!%p1520_p7)
}
  0x12   :  { %s1621_s7 = smov 128   ;;  %s1622_s8 = smov 8  }
  0x13   :  { %39 = dma.hbm_to_vmem [thread:$0]  %s1855_s2, 512, %s34_s22, [#allocation7], %s1621_s7, %s1621_s7, %s1622_s8  }
  0x14   :  { %s1623_s11 = smov [#allocation3]   ;;  %s1624_s13 = smov [#allocation8]  }
  0x15   :  { %s24_s12 = sshll.u32 %s1623_s11, 4  ;;  %s48_s14 = sshll.u32 %s1624_s13, 4  ;;  %s25_s12 = int_to_ptr.vmem [resolvable:$true] %s24_s12  ;;  %s49_s14 = int_to_ptr.vmem [resolvable:$true] %s48_s14 }
  0x16   :  { %s1524_s17 = scalar_lea.hbm %s1854_s1, 128 }
  0x17   :  { %p1525_p8 = scmp.ne.s32.totalorder %s1854_s1, %s1524_s17  ;;  %p1528_p9 = scmp.lt.u32.totalorder %s1524_s17, %s1854_s1 }
  0x19   :  { %p1530_p10 = pnand %p1528_p9, %p1525_p8 }
  0x1b   :  { %1533 = shalt.err (!%p1530_p10)
}
  0x1c   :  { %s1534_s2 = scalar_lea.vmem %s25_s12, 128  ;;  %p1539_p12 = scmp.lt.s32.totalorder %s25_s12, %s25_s12 }
  0x1d   :  { %p1535_p11 = scmp.ne.s32.totalorder %s25_s12, %s1534_s2  ;;  %p1540_p13 = scmp.lt.s32.totalorder %s1534_s2, %s1534_s2 }
  0x1f   :  { %p1541_p0 = por %p1540_p13, %p1539_p12 }
  0x21   :  { %p1542_p1 = pnand %p1541_p0, %p1535_p11 }
  0x23   :  { %1545 = shalt.err (!%p1542_p1)
}
  0x24   :  { %27 = dma.hbm_to_vmem [thread:$0]  %s1854_s1, 128, %s25_s12, [#allocation4]  }
  0x25   :  { %s1546_s26 = scalar_lea.hbm %s1857_s4, 128 }
  0x26   :  { %p1547_p2 = scmp.ne.s32.totalorder %s1857_s4, %s1546_s26  ;;  %p1550_p3 = scmp.lt.u32.totalorder %s1546_s26, %s1857_s4 }
  0x28   :  { %p1552_p4 = pnand %p1550_p3, %p1547_p2 }
  0x2a   :  { %1555 = shalt.err (!%p1552_p4)
}
  0x2b   :  { %s1556_s9 = scalar_lea.vmem %s49_s14, 128  ;;  %p1561_p6 = scmp.lt.s32.totalorder %s49_s14, %s49_s14 }
  0x2c   :  { %p1557_p5 = scmp.ne.s32.totalorder %s49_s14, %s1556_s9  ;;  %p1562_p7 = scmp.lt.s32.totalorder %s1556_s9, %s1556_s9 }
  0x2e   :  { %p1563_p8 = por %p1562_p7, %p1561_p6 }
  0x30   :  { %p1564_p9 = pnand %p1563_p8, %p1557_p5 }
  0x32   :  { %1567 = shalt.err (!%p1564_p9)
}
  0x33   :  { %51 = dma.hbm_to_vmem [thread:$0]  %s1857_s4, 128, %s49_s14, [#allocation7]  }
  0x34   :  { %s1625_s11 = smov [#allocation9]   ;;  %s1568_s16 = scalar_lea.hbm %s1858_s5, 512 }
  0x35   :  { %s57_s12 = sshll.u32 %s1625_s11, 4  ;;  %p1569_p10 = scmp.ne.s32.totalorder %s1858_s5, %s1568_s16  ;;  %s58_s12 = int_to_ptr.vmem [resolvable:$true] %s57_s12 }
  0x36   :  { %p1572_p11 = scmp.lt.u32.totalorder %s1568_s16, %s1858_s5 }
  0x38   :  { %p1574_p12 = pnand %p1572_p11, %p1569_p10 }
  0x3a   :  { %1577 = shalt.err (!%p1574_p12)
}
  0x3b   :  { %s1578_s21 = scalar_lea.vmem %s58_s12, 512  ;;  %p1583_p0 = scmp.lt.s32.totalorder %s58_s12, %s58_s12 }
  0x3c   :  { %p1579_p13 = scmp.ne.s32.totalorder %s58_s12, %s1578_s21  ;;  %p1584_p1 = scmp.lt.s32.totalorder %s1578_s21, %s1578_s21 }
  0x3e   :  { %p1585_p2 = por %p1584_p1, %p1583_p0 }
  0x40   :  { %p1586_p3 = pnand %p1585_p2, %p1579_p13 }
  0x42   :  { %1589 = shalt.err (!%p1586_p3)
}
  0x43   :  { %63 = dma.hbm_to_vmem [thread:$0]  %s1858_s5, 512, %s58_s12, [#allocation10], %s1621_s7, %s1621_s7, %s1622_s8  }
  0x44   :  { %1612 = dma.done.wait [#allocation4], 128  }
  0x45   :  { %1613 = vsyncadd [#allocation4], 4294967168 }
  0x46   :  { %1614 = dma.done.wait [#allocation7], 640  }
  0x47   :  { %1615 = vsyncadd [#allocation7], 4294966656 }
  0x48   :  { %1616 = dma.done.wait [#allocation10], 512  }
  0x49   :  { %1617 = vsyncadd [#allocation10], 4294966784  ;;  %v1626_v0 = vmov 0.0|0.0   ;;  %vm1627_vm0 = vmmov 0   ;;  %v1628_v1 = vmov 0.0   ;;  %v78_v2 = vld [vmem:[#allocation6] sm:$0xff]  ;;  %v403_v25 = vstv %s1853_s0 }
  0x4a   :  { %1395 = vmatprep.subr.bf16.mxu1 %v1626_v0  ;;  %1296 = vmatprep.mubr.msk.f32.mxu1 %vm1627_vm0, %v1628_v1  ;;  %v79_v3 = vld [vmem:[#allocation6 + $0x8] sm:$0xff]  ;;  %v80_v4 = vld [vmem:[#allocation6 + $0x10] sm:$0xff]  ;;  %v81_v6 = vld [vmem:[#allocation6 + $0x18] sm:$0xff]  ;;  %s1629_s5 = smov 64   ;;  %vm84_vm1 = vcmask 261120   ;;  %s1630_s7 = smov 96  }
  0x4b   :  { %1409 = vmatprep.subr.bf16.mxu0 %v1626_v0  ;;  %1318 = vmatprep.mubr.msk.f32.mxu0 %vm1627_vm0, %v1628_v1  ;;  %v1396_v5 = vpack.c.bf16 %v79_v3, %v78_v2  ;;  %v1469_v7 = vpack.i.bf16 %v81_v6, %v80_v4  ;;  %v1399_v8 = vpack.c.bf16 %v81_v6, %v80_v4  ;;  %v1729_v10 = vld [vmem:[#allocation3] sm:$0xff]  ;;  %vm1738_vm2 = vmpackc.low %vm84_vm1, %vm84_vm1  ;;  %s1631_s8 = smov 32   ;;  %v1773_v34 = vld [vmem:[#allocation8] sm:$0xff]  ;;  %vm411_vm3 = vcmask 64512   ;;  %s1632_s0 = smov [#allocation11]  }
  0x4c   :  { %v1474_v9 = vpack.i.bf16 %v79_v3, %v78_v2  ;;  %v1778_v35 = vld [vmem:[%s1856_s3] sm:$0xff]  ;;  %v1045_v49 = vld [vmem:[#allocation9] sm:$0xff]  ;;  %v1046_v50 = vld [vmem:[#allocation9 + $0x8] sm:$0xff]  ;;  %s1198_s28 = sshll.u32 %s1632_s0, 4  ;;  %s1199_s28 = int_to_ptr.vmem [resolvable:$true] %s1198_s28 }
  0x4d   :  { %1397 = vmatpush3.bf16.msra.mxu1 %v1396_v5  ;;  %1470 = vrot.lane.b32.xlu1 %v1469_v7, %s1629_s5  ;;  %v1800_v51 = vpack.c.bf16 %v1046_v50, %v1045_v49  ;;  %v1047_v52 = vld [vmem:[#allocation9 + $0x10] sm:$0xff]  ;;  %v1048_v53 = vld [vmem:[#allocation9 + $0x18] sm:$0xff]  ;;  %s1590_s29 = scalar_lea.vmem %s1199_s28, 128  ;;  %p1595_p5 = scmp.lt.s32.totalorder %s1199_s28, %s1199_s28 }
  0x4e   :  { %1398 = vmatprep.subr.bf16.mxu1 %v1626_v0  ;;  %v1804_v54 = vpack.c.bf16 %v1048_v53, %v1047_v52  ;;  %p1591_p4 = scmp.ne.s32.totalorder %s1199_s28, %s1590_s29  ;;  %p1596_p6 = scmp.lt.s32.totalorder %s1590_s29, %s1590_s29 }
  0x50   :  { %p1597_p7 = por %p1596_p6, %p1595_p5 }
  0x51   :  { %1400 = vmatpush3.bf16.msra.mxu1 %v1399_v8  ;;  %1475 = vrot.lane.b32.xlu1 %v1474_v9, %s1630_s7 }
  0x52   :  { %1401 = vmatprep.subr.bf16.mxu1 %v1626_v0  ;;  %p1598_p8 = pnand %p1597_p7, %p1591_p4 }
  0x54   :  { %1297 = vmatmul.mubr.msk.f32.vlgmr.msra.gmra.mrb[0].mxu1 %vm84_vm1, %v1729_v10 }
  0x55   :  { %1307 = vmatprep.mubr.msk.f32.mxu1 %vm1627_vm0, %v1628_v1 }
  0x5a   :  { %1404 = vmatpush3.bf16.xpose.msk.msra.mxu1 %vm1738_vm2, %v1396_v5 }
  0x5b   :  { %1405 = vmatprep.subr.bf16.mxu1 %v1626_v0 }
  0x62   :  { %1408 = vmatpush3.bf16.xpose.msk.msra.mxu1 %vm1738_vm2, %v1399_v8 }
  0x63   :  { %1321 = vmatprep.subr.mxu1 %v1628_v1 }
  0xbf   :  { %v1471_v19 = vpop.permute.xlu1 %1470 }
  0xc0   :  { %v1473_v20 = vunpack.i.h.bf16 %v1471_v19  ;;  %v1472_v21 = vunpack.i.l.bf16 %v1471_v19 }
  0xc2   :  { %v1414_v22 = vpack.c.bf16 %v1473_v20, %v1472_v21 }
  0xc3   :  { %v1476_v31 = vpop.permute.xlu1 %1475 }
  0xc4   :  { %v1478_v32 = vunpack.i.h.bf16 %v1476_v31  ;;  %v1477_v33 = vunpack.i.l.bf16 %v1476_v31 }
  0xc6   :  { %v1418_v37 = vpack.c.bf16 %v1478_v32, %v1477_v33 }
 0x127   :  { %v154_v12 = vpop.f32.mrb[0].mxu1 }
 0x128   :  { %600 = vrot.lane.b32.xlu1 %v154_v12, %s1631_s8  ;;  %159 = vrot.lane.b32.xlu0 %v154_v12, %s1629_s5  ;;  %v1298_v13 = vpop.f32.mrb[1].mxu1 }
 0x12c   :  { %1465 = vrot.lane.b32.xlu0 %v1474_v9, %s1629_s5 }
 0x130   :  { %1480 = vrot.lane.b32.xlu0 %v1469_v7, %s1630_s7 }
 0x134   :  { %690 = vrot.lane.b32.xlu0 %v154_v12, %s1630_s7 }
 0x138   :  { %1485 = vrot.lane.b32.xlu0 %v1474_v9, %s1631_s8 }
 0x13c   :  { %1490 = vrot.lane.b32.xlu0 %v1469_v7, %s1631_s8 }
 0x19a   :  { %v160_v14 = vpop.permute.xlu0 %159  ;;  %v601_v47 = vpop.permute.xlu1 %600 }
 0x19b   :  { %1308 = vmatmul.mubr.msk.f32.vlgmr.msra.gmra.mrb[2].mxu1 %vm84_vm1, %v160_v14 }
 0x19c   :  { %1322 = vmatpush3.xpose.msk.msra.mxu1 %vm84_vm1, %v160_v14  ;;  %1323 = vmatprep.mubr.msk.f32.mxu1 %vm1627_vm0, %v1628_v1 }
 0x19d   :  { %1326 = vmatprep.subr.mxu1 %v1628_v1 }
 0x19e   :  { %v1466_v15 = vpop.permute.xlu0 %1465 }
 0x19f   :  { %v1468_v16 = vunpack.i.h.bf16 %v1466_v15  ;;  %v1467_v17 = vunpack.i.l.bf16 %v1466_v15  ;;  %1324 = vmatmul.mubr.msk.f32.vlgmr.msra.gmra.mrb[4].mxu1 %vm84_vm1, %v154_v12 }
 0x1a0   :  { %1328 = vmatprep.mubr.msk.f32.mxu1 %vm1627_vm0, %v1628_v1 }
 0x1a1   :  { %v1410_v18 = vpack.c.bf16 %v1468_v16, %v1467_v17 }
 0x1a2   :  { %v1481_v41 = vpop.permute.xlu0 %1480 }
 0x1a3   :  { %1412 = vmatpush3.bf16.xpose.msk.msra.mxu0 %vm1738_vm2, %v1410_v18  ;;  %v1483_v44 = vunpack.i.h.bf16 %v1481_v41  ;;  %v1482_v45 = vunpack.i.l.bf16 %v1481_v41 }
 0x1a4   :  { %1413 = vmatprep.subr.bf16.mxu0 %v1626_v0 }
 0x1a5   :  { %v1422_v46 = vpack.c.bf16 %v1483_v44, %v1482_v45 }
 0x1a6   :  { %v691_v48 = vpop.permute.xlu0 %690 }
 0x1aa   :  { %v1486_v56 = vpop.permute.xlu0 %1485 }
 0x1ab   :  { %1416 = vmatpush3.bf16.xpose.msk.msra.mxu0 %vm1738_vm2, %v1414_v22  ;;  %v1488_v62 = vunpack.i.h.bf16 %v1486_v56  ;;  %v1487_v63 = vunpack.i.l.bf16 %v1486_v56 }
 0x1ac   :  { %1331 = vmatprep.subr.mxu0 %v1628_v1 }
 0x1ad   :  { %v1426_v2 = vpack.c.bf16 %v1488_v62, %v1487_v63 }
 0x1ae   :  { %v1491_v57 = vpop.permute.xlu0 %1490 }
 0x1af   :  { %v1493_v3 = vunpack.i.h.bf16 %v1491_v57  ;;  %v1492_v4 = vunpack.i.l.bf16 %v1491_v57 }
 0x1b1   :  { %v1430_v5 = vpack.c.bf16 %v1493_v3, %v1492_v4 }
 0x1b2   :  { %1319 = vmatmul.mubr.msk.f32.vlgmr.msra.gmra.mrb[0].mxu0 %vm84_vm1, %v154_v12 }
 0x1b3   :  { %1333 = vmatprep.mubr.msk.f32.mxu0 %vm1627_vm0, %v1628_v1 }
 0x26e   :  { %v241_v23 = vpop.f32.mrb[2].mxu1 }
 0x26f   :  { %v1309_v24 = vpop.f32.mrb[3].mxu1  ;;  %1327 = vmatpush3.msra.mxu1 %v241_v23 }
 0x270   :  { %1417 = vmatprep.subr.bf16.mxu1 %v1626_v0 }
 0x272   :  { %v399_v26 = vpop.f32.mrb[4].mxu1 }
 0x273   :  { %v404_v27 = vmul.f32 %v403_v25, %v399_v26  ;;  %v1325_v28 = vpop.f32.mrb[5].mxu1 }
 0x275   :  { %v1222_v29 = vclamps-f32 %v404_v27, 5.0 }
 0x277   :  { %v407_v30 = vmul.f32 1.442695, %v1222_v29 }
 0x279   :  { %1494 = vpow2.f32 %v407_v30 }
 0x283   :  { %v1495_v36 = vpop.eup %1494 }
 0x284   :  { %v410_v38 = vmul.f32 %v1495_v36, %v1773_v34  ;;  %v409_v39 = vmul.f32 %v1495_v36, %v1778_v35 }
 0x285   :  { %v329_v40 = vpop.f32.mrb[0].mxu0 }
 0x286   :  { %v1320_v42 = vpop.f32.mrb[1].mxu0  ;;  %1329 = vmatmul.mubr.msk.f32.vlgmr.msra.gmra.mrb[6].mxu1 %vm411_vm3, %v410_v38  ;;  %492 = vxpose.xlu0.b32.start.end [1/1] (short) (narrow) %v409_v39, 8  ;;  %v412_v43 = vsel %vm411_vm3, %v410_v38, 0.0 }
 0x287   :  { %1420 = vmatpush3.bf16.xpose.msk.msra.mxu1 %vm1738_vm2, %v1418_v37  ;;  %413 = vadd.xlane.f32.xlu1 %v412_v43 }
 0x288   :  { %1421 = vmatprep.subr.bf16.mxu1 %v1626_v0  ;;  %1344 = vmatprep.mubr.msk.f32.mxu1 %vm1627_vm0, %v1628_v1 }
 0x28f   :  { %1424 = vmatpush3.bf16.xpose.msk.msra.mxu1 %vm1738_vm2, %v1422_v46 }
 0x290   :  { %1358 = vmatprep.subr.mxu1 %v1628_v1 }
 0x296   :  { %1345 = vmatmul.mubr.msk.f32.vlgmr.msra.gmra.mrb[8].mxu1 %vm84_vm1, %v601_v47 }
 0x297   :  { %1359 = vmatpush3.xpose.msk.msra.mxu1 %vm84_vm1, %v601_v47  ;;  %1360 = vmatprep.mubr.msk.f32.mxu1 %vm1627_vm0, %v1628_v1 }
 0x298   :  { %1433 = vmatprep.subr.bf16.mxu1 %v1626_v0 }
 0x29a   :  { %1361 = vmatmul.mubr.msk.f32.vlgmr.msra.gmra.mrb[10].mxu1 %vm84_vm1, %v691_v48 }
 0x29b   :  { %1381 = vmatprep.mubr.msk.f32.mxu1 %vm1627_vm0, %v1628_v1  ;;  %1435 = vmatpush3.bf16.msra.mxu1 %v1800_v51 }
 0x29c   :  { %1436 = vmatprep.subr.bf16.mxu1 %v1626_v0 }
 0x29f   :  { %1438 = vmatpush3.bf16.msra.mxu1 %v1804_v54 }
 0x2a2   :  { %1382 = vmatmul.mubr.msk.f32.vlgmr.msra.gmra.mrb[12].mxu1 %vm84_vm1, %v1729_v10 }
 0x306   :  { %v508_v61 = vpop.trf.xlu0 }
 0x314   :  { %v414_v55 = vpop.xlane.xlu1 %413 }
 0x315   :  { %1496 = vrcp.f32 %v414_v55  ;;  %vm415_vm4 = vcmp.gt.f32.partialorder %v414_v55, 0.0 }
 0x31f   :  { %v1497_v58 = vpop.eup %1496 }
 0x320   :  { %v417_v59 = vsel %vm415_vm4, %v1497_v58, 0.0 }
 0x321   :  { %v491_v60 = vmul.f32 %v417_v59, %v329_v40 }
 0x323   :  { %1332 = vmatpush3.msra.mxu0 %v491_v60 }
 0x324   :  { %1425 = vmatprep.subr.bf16.mxu0 %v1626_v0  ;;  %1334 = vmatmul.mubr.msk.f32.vlgmr.msra.gmra.mrb[2].mxu0 %vm411_vm3, %v508_v61 }
 0x325   :  { %1355 = vmatprep.mubr.msk.f32.mxu0 %vm1627_vm0, %v1628_v1 }
 0x32a   :  { %1428 = vmatpush3.bf16.xpose.msk.msra.mxu0 %vm1738_vm2, %v1426_v2 }
 0x32b   :  { %1429 = vmatprep.subr.bf16.mxu0 %v1626_v0 }
 0x332   :  { %1432 = vmatpush3.bf16.xpose.msk.msra.mxu0 %vm1738_vm2, %v1430_v5 }
 0x333   :  { %1363 = vmatprep.subr.mxu0 %v1628_v1 }
 0x339   :  { %1356 = vmatmul.mubr.msk.f32.vlgmr.msra.gmra.mrb[4].mxu0 %vm84_vm1, %v691_v48 }
 0x33a   :  { %1365 = vmatprep.mubr.msk.f32.mxu0 %vm1627_vm0, %v1628_v1 }
 0x359   :  { %v487_v6 = vpop.f32.mrb[6].mxu1 }
 0x35a   :  { %v597_v7 = vmul.f32 %v487_v6, %v417_v59  ;;  %v1330_v8 = vpop.f32.mrb[7].mxu1 }
 0x369   :  { %v686_v9 = vpop.f32.mrb[8].mxu1 }
 0x36a   :  { %v1346_v10 = vpop.f32.mrb[9].mxu1  ;;  %1364 = vmatpush3.msra.mxu0 %v686_v9 }
 0x36b   :  { %1368 = vmatprep.subr.mxu0 %v1628_v1 }
 0x36d   :  { %v846_v12 = vpop.f32.mrb[10].mxu1 }
 0x36e   :  { %v850_v11 = vmul.f32 %v846_v12, %v403_v25  ;;  %v1362_v13 = vpop.f32.mrb[11].mxu1 }
 0x370   :  { %v1237_v14 = vclamps-f32 %v850_v11, 5.0 }
 0x372   :  { %v853_v15 = vmul.f32 1.442695, %v1237_v14 }
 0x374   :  { %1498 = vpow2.f32 %v853_v15 }
 0x375   :  { %v1115_v20 = vpop.f32.mrb[12].mxu1 }
 0x376   :  { %v1383_v21 = vpop.f32.mrb[13].mxu1  ;;  %v1119_v29 = vmax.f32 %v1115_v20, 0.0 }
 0x37e   :  { %v1499_v16 = vpop.eup %1498 }
 0x37f   :  { %v856_v17 = vmul.f32 %v1499_v16, %v1773_v34  ;;  %v855_v19 = vmul.f32 %v1499_v16, %v1778_v35 }
 0x381   :  { %1366 = vmatmul.mubr.msk.f32.vlgmr.msra.gmra.mrb[6].mxu0 %vm411_vm3, %v856_v17  ;;  %v857_v18 = vsel %vm411_vm3, %v856_v17, 0.0 }
 0x382   :  { %858 = vadd.xlane.f32.xlu1 %v857_v18  ;;  %1370 = vmatprep.mubr.msk.f32.mxu0 %vm1627_vm0, %v1628_v1 }
 0x3b5   :  { %937 = vxpose.xlu1.b32.start.end [1/1] (short) (narrow) %v855_v19, 8 }
 0x40c   :  { %v776_v22 = vpop.f32.mrb[4].mxu0 }
 0x40d   :  { %v1357_v23 = vpop.f32.mrb[5].mxu0 }
 0x40f   :  { %v859_v24 = vpop.xlane.xlu1 %858 }
 0x410   :  { %1500 = vrcp.f32 %v859_v24  ;;  %vm860_vm5 = vcmp.gt.f32.partialorder %v859_v24, 0.0 }
 0x41a   :  { %v1501_v25 = vpop.eup %1500 }
 0x41b   :  { %v862_v26 = vsel %vm860_vm5, %v1501_v25, 0.0 }
 0x41c   :  { %v936_v27 = vmul.f32 %v862_v26, %v776_v22 }
 0x41e   :  { %1369 = vmatpush3.msra.mxu0 %v936_v27 }
 0x41f   :  { %1439 = vmatprep.subr.bf16.mxu0 %v1626_v0 }
 0x435   :  { %v953_v28 = vpop.trf.xlu1 }
 0x436   :  { %1371 = vmatmul.mubr.msk.f32.vlgmr.msra.gmra.mrb[2].mxu0 %vm411_vm3, %v953_v28 }
 0x437   :  { %1441 = vmatpush3.bf16.xpose.msra.mxu0 %v1800_v51  ;;  %1392 = vmatprep.mubr.msk.f32.mxu0 %vm1627_vm0, %v1628_v1 }
 0x438   :  { %1442 = vmatprep.subr.bf16.mxu0 %v1626_v0 }
 0x43f   :  { %1444 = vmatpush3.bf16.xpose.msra.mxu0 %v1804_v54 }
 0x446   :  { %1393 = vmatmul.mubr.f32.vlgmr.msra.gmra.mrb[2].mxu0 %v1119_v29 }
 0x454   :  { %v932_v30 = vpop.f32.mrb[6].mxu0 }
 0x455   :  { %v1042_v31 = vmul.f32 %v932_v30, %v862_v26  ;;  %v1367_v32 = vpop.f32.mrb[7].mxu0 }
 0x457   :  { %v1445_v33 = vadd.f32 %v1042_v31, %v597_v7 }
 0x519   :  { %v1186_v34 = vpop.f32.mrb[2].mxu0 }
 0x51a   :  { %v1446_v35 = vadd.f32 %v1445_v33, %v1186_v34  ;;  %v1394_v36 = vpop.f32.mrb[3].mxu0 }
 0x51c   :  { %1191 = vst.msk [vmem:[#allocation11] sm:$0xff] %vm84_vm1, %v1446_v35 }
 0x51d   :  { %1601 = shalt.err (!%p1598_p8)
}
 0x51e   :  { %s1602_s1 = scalar_lea.hbm %s1859_s6, 128 }
 0x51f   :  { %p1603_p9 = scmp.ne.s32.totalorder %s1859_s6, %s1602_s1  ;;  %p1606_p10 = scmp.lt.u32.totalorder %s1602_s1, %s1859_s6 }
 0x521   :  { %p1608_p11 = pnand %p1606_p10, %p1603_p9 }
 0x523   :  { %1611 = shalt.err (!%p1608_p11)
}
 0x524   :  { %1201 = dma.vmem_to_hbm [thread:$0]  %s1199_s28, 128, %s1859_s6, [#allocation5]  }
 0x525   :  { %1618 = dma.done.wait [#allocation5], 128  }
 0x526   :  { %1619 = vsyncadd [#allocation5], 4294967168 }
 0x527   :  { %1205 = vsyncpa [#allocation4], 1 }
 0x528   :  { %1206 = vsyncpa [#allocation7], 1 }
 0x529   :  { %1207 = vsyncpa [#allocation10], 1 }
 0x52a   :  { %1208 = vsyncpa [#allocation5], 1 }

</bundles_post_ra>
